<compile_context>
chip_gen: v7x
topology: tpu7x:2x2x1
jax: 0.10.0
libtpu: 0.0.40
codegen_flags: <defaults>
</compile_context>

<pallas_src>
import math

import jax
import jax.numpy as jnp
from jax.experimental import pallas as pl
from jax.experimental.pallas import tpu as pltpu


# Below this much total HBM traffic (read + write), kernel launch + grid fixed
# cost dominates a sub-microsecond copy; XLA's fused convert is cheaper.
_MIN_PALLAS_BYTES = 256 * 1024

# Per-grid-step f32 output target (~8 MiB) amortizes the ~0.35 us per-step
# overhead to a few % of step HBM time on every generation.  The block budget
# (2x in + 2x out buffers) and the VMEM limit stay <= 48 MiB so v7x's 64 MiB
# physical VMEM keeps headroom; v5e/v6e (128 MiB) are trivially safe.
_TARGET_OUT_BYTES = 8 * 1024 * 1024
_VMEM_BLOCK_BUDGET = 44 * 1024 * 1024
_VMEM_LIMIT_BYTES = 48 * 1024 * 1024


# ----------------------------------------------------------------------------
# Pallas kernel: pure lane-dense copy with the dtype cast fused
# (source dtype -> float32).  No reshape / relayout happens inside the kernel.
# ----------------------------------------------------------------------------
def _cast_copy_kernel(x_ref, o_ref):
    o_ref[...] = x_ref[...].astype(o_ref.dtype)


def _round_up(x, m):
    return ((x + m - 1) // m) * m


def _core_parallel_supported():
    # Only CORE_PARALLEL actually shards a grid axis across TensorCores (the
    # "parallel" string has near-zero codegen effect).  v7x has 2 TCs/chip;
    # on single-TC v5e/v6e we keep the known-good "parallel" path.
    if not hasattr(pltpu, "CORE_PARALLEL"):
        return False
    try:
        kind = jax.devices()[0].device_kind.lower()
    except Exception:
        return False
    return "v7" in kind


def _pick_block_rows(n, in_bytes):
    # ~8 MiB of f32 output per grid step.
    rows = _TARGET_OUT_BYTES // (n * 4)
    # Cap so double-buffered input + output blocks fit the VMEM block budget.
    per_row_resident = 2 * n * (4 + in_bytes)
    rows = min(rows, _VMEM_BLOCK_BUDGET // per_row_resident)
    # Multiple of 32 sublanes: int8/uint8 pack 32 rows per vreg (bf16: 16),
    # keeping the in-kernel cast on full, unmasked vregs.
    rows = max(32, (rows // 32) * 32)
    return rows


def _pallas_flatten_cast(x2, *, block_rows=None):
    """x2: (B, n) array (non-f32 dtype) -> (B, n) float32 via a tiled Pallas kernel."""
    b, n = x2.shape
    in_bytes = jnp.dtype(x2.dtype).itemsize
    core_parallel = _core_parallel_supported()

    if block_rows is None:
        block_rows = _pick_block_rows(n, in_bytes)
    else:
        block_rows = max(8, _round_up(int(block_rows), 8))

    if block_rows >= b:
        if core_parallel and b >= 64:
            # Give both v7x TensorCores at least one grid step of work.
            block_rows = min(b, _round_up(-(-b // 2), 32))
        if block_rows >= b:
            # Single block covering the whole batch (full-extent first dim is
            # a legal block shape even when b is not a multiple of 8).
            block_rows = b

    grid = (pl.cdiv(b, block_rows),)
    # CORE_PARALLEL only when there are >=2 steps to shard across the 2 TCs.
    if core_parallel and grid[0] >= 2:
        dim_sem = (pltpu.CORE_PARALLEL,)
    else:
        dim_sem = ("parallel",)

    return pl.pallas_call(
        _cast_copy_kernel,
        out_shape=jax.ShapeDtypeStruct((b, n), jnp.float32),
        grid_spec=pltpu.PrefetchScalarGridSpec(
            num_scalar_prefetch=0,
            grid=grid,
            in_specs=[pl.BlockSpec((block_rows, n), lambda i: (i, 0))],
            out_specs=pl.BlockSpec((block_rows, n), lambda i: (i, 0)),
        ),
        compiler_params=pltpu.CompilerParams(
            dimension_semantics=dim_sem,
            vmem_limit_bytes=_VMEM_LIMIT_BYTES,
        ),
        cost_estimate=pl.CostEstimate(
            flops=0,
            transcendentals=0,
            bytes_accessed=int(b) * int(n) * (int(in_bytes) + 4),
        ),
    )(x2)


# ----------------------------------------------------------------------------
# Wrapper reproducing BoxInputModule.forward semantics.  Shape glue is plain
# JAX metadata ops; the only device kernel (fused cast + copy) is launched
# only when a cast is required and the input is big enough to amortize launch
# cost.  Output features are always float32 (the module's feature dtype).
# ----------------------------------------------------------------------------
def box_input_forward(x, space_shape, *, block_rows=None,
                      min_pallas_bytes=_MIN_PALLAS_BYTES):
    x = jnp.asarray(x)  # NOTE: no eager f32 cast here — cast is fused in-kernel
    space_shape = tuple(int(s) for s in space_shape)
    n = int(math.prod(space_shape)) if space_shape else 1

    if len(space_shape) == 0:
        # Scalar Box space: torch unsqueezes unless a trailing singleton
        # feature axis is already present (X.shape[-1] == 1).
        x = x.astype(jnp.float32)
        if x.ndim == 0 or x.shape[-1] != 1:
            return x[..., None]
        return x

    if x.ndim >= 1 and x.shape[-1] == n:
        flat = x  # already flat -> passthrough shape-wise (torch returns X as-is)
    elif x.ndim >= len(space_shape) and tuple(x.shape[-len(space_shape):]) == space_shape:
        lead = x.shape[: -len(space_shape)]
        # Collapse of contiguous trailing dims: metadata-only on the HBM
        # array, so the kernel only ever sees a lane-dense (B, n) block.
        # If a compiled-HLO check ever shows this reshape materializing under
        # TPU tiled layouts, feed the N-D array to pallas_call directly.
        flat = x.reshape(lead + (n,))
    else:
        raise ValueError(
            f"Confused about input with shape {tuple(x.shape)} for "
            f"BoxInputModule from space {space_shape}"
        )

    if flat.dtype == jnp.float32:
        # No cast needed: bare reshape is free (zero HBM traffic); a copy
        # kernel would only add 2*B*n*4 bytes of traffic + launch overhead.
        return flat

    # Cast needed (uint8 / int8 / bf16 observations): fuse it into the tiled
    # Pallas copy (read 1-2 B/elem, write 4 B/elem).
    lead = flat.shape[:-1]
    b = int(math.prod(lead)) if lead else 1
    traffic = b * n * (jnp.dtype(flat.dtype).itemsize + 4)
    if traffic < min_pallas_bytes:
        # Tiny input: launch + grid fixed cost dominates; XLA's fused convert
        # is equally HBM-bound and cheaper to launch.
        return flat.astype(jnp.float32)
    out = _pallas_flatten_cast(flat.reshape((b, n)), block_rows=block_rows)
    return out.reshape(lead + (n,))


if __name__ == "__main__":
    key = jax.random.PRNGKey(0)
    k1, k2, k3, k4 = jax.random.split(key, 4)

    # Box space of shape (C, H, W) = (4, 16, 16); n = 1024 (lane-dense, 8x128).
    space_shape = (4, 16, 16)
    n = int(math.prod(space_shape))

    # 1) Spec shape (2, 4, 16, 16), int8 observations -> Pallas kernel path
    #    (forced past the small-input fallback so the fused int8->f32 cast
    #    kernel runs on the spec shape).
    B = 2
    x_i8 = jax.random.randint(k1, (B,) + space_shape, -128, 128, dtype=jnp.int8)
    out = jax.block_until_ready(
        box_input_forward(x_i8, space_shape, min_pallas_bytes=0))
    ref = x_i8.astype(jnp.float32).reshape(B, n)
    assert out.shape == (B, n) and out.dtype == jnp.float32, (out.shape, out.dtype)
    assert bool(jnp.array_equal(out, ref)), "int8 kernel path mismatch"

    # 1b) Same tiny input through the default path: small-input fallback
    #     (XLA convert, no kernel launch) must agree numerically.
    out_small = jax.block_until_ready(box_input_forward(x_i8, space_shape))
    assert bool(jnp.array_equal(out_small, ref)), "small-input fallback mismatch"

    # 2) Multi-block grid path (incl. masked partial last block): bf16 batch
    #    of 80, forced 32-row tiles -> grid=(3,), last block 16 rows.  ~480 KiB
    #    of traffic clears the default Pallas threshold.
    Bg = 80
    xb = jax.random.normal(k2, (Bg,) + space_shape, dtype=jnp.float32).astype(jnp.bfloat16)
    outb = jax.block_until_ready(box_input_forward(xb, space_shape, block_rows=32))
    refb = xb.astype(jnp.float32).reshape(Bg, n)
    assert outb.shape == (Bg, n) and bool(jnp.array_equal(outb, refb)), "bf16 grid path mismatch"

    # 2b) Default (heuristic) block size on the same input.
    outb2 = jax.block_until_ready(box_input_forward(xb, space_shape))
    assert bool(jnp.array_equal(outb2, refb)), "default-block path mismatch"

    # 3) float32 input -> kernel skipped, metadata-only reshape.
    x_f32 = jax.random.normal(k3, (B,) + space_shape, dtype=jnp.float32)
    out3 = jax.block_until_ready(box_input_forward(x_f32, space_shape))
    assert bool(jnp.array_equal(out3, x_f32.reshape(B, n)))

    # 4) Already-flat passthrough and scalar-space branches (pure shape glue).
    flat_in = jax.random.normal(k4, (B, n), dtype=jnp.float32)
    out4 = jax.block_until_ready(box_input_forward(flat_in, space_shape))
    assert out4.shape == (B, n)
    scalar_out = box_input_forward(jnp.ones((B,), jnp.float32), ())
    assert scalar_out.shape == (B, 1)
    # torch keeps a pre-existing trailing singleton feature axis as-is.
    scalar_keep = box_input_forward(jnp.ones((B, 1), jnp.float32), ())
    assert scalar_keep.shape == (B, 1)

    # TODO(synk): LoggingModule's log_to/to_eval/log hooks and the
    # gym.spaces.Box type validation are host-side Python with no device op
    # to translate.
    print("KERNEL_OK")
</pallas_src>

<mosaic_0001>
module attributes {stable_mosaic.version = 11 : i64} {
  func.func @_cast_copy_kernel(%arg0: i32, %arg1: memref<2x1024xi8, #tpu.memory_space<vmem>>, %arg2: memref<2x1024xf32, #tpu.memory_space<vmem>>) attributes {dimension_semantics = [#tpu.dimension_semantics<parallel>], iteration_bounds = array<i64: 1>, scalar_prefetch = 0 : i64, scratch_operands = 0 : i64, tpu.core_type = #tpu.core_type<tc>, window_params = [{transform_indices = @transform_0, window_bounds = array<i64: 2, 1024>}, {transform_indices = @transform_1, window_bounds = array<i64: 2, 1024>}]} {
    %c0 = arith.constant 0 : index
    %c0_0 = arith.constant 0 : index
    %0 = vector.load %arg1[%c0, %c0_0] : memref<2x1024xi8, #tpu.memory_space<vmem>>, vector<2x1024xi8>
    %1 = arith.sitofp %0 : vector<2x1024xi8> to vector<2x1024xf32>
    %c0_1 = arith.constant 0 : index
    %c0_2 = arith.constant 0 : index
    %2 = vector.load %arg2[%c0_1, %c0_2] : memref<2x1024xf32, #tpu.memory_space<vmem>>, vector<2x1024xf32>
    tpu.vector_store %arg2[%c0_1, %c0_2], %1 {strides = array<i32>} : memref<2x1024xf32, #tpu.memory_space<vmem>>, vector<2x1024xf32>,
    return
  }
  func.func @transform_0(%arg0: i32) -> (i32, i32) {
    %c0_i32 = arith.constant 0 : i32
    %c0_i32_0 = arith.constant 0 : i32
    return %arg0, %c0_i32 : i32, i32
  }
  func.func @transform_1(%arg0: i32) -> (i32, i32) {
    %c0_i32 = arith.constant 0 : i32
    %c0_i32_0 = arith.constant 0 : i32
    return %arg0, %c0_i32 : i32, i32
  }
}

</mosaic_0001>

<bundles_post_ra>
// kernel: tpu_custom_call.1
= control target key start
LH: loop header
LB: loop body
LE: loop exit
PB: predicated region body
PF: predicated region fallthrough
CT: control target
= control target key end

     0   :  { %6 = vsyncpa [#allocation3], 0  ;;  %s171_s0 = inlined_call_operand.hbm [shape: s8[2,1024], index: 0, kind: input, shape index: {}]   ;;  %s172_s1 = inlined_call_operand.hbm [shape: f32[2,1024], index: 1, kind: output, shape index: {}]  }
   0x1   :  { %7 = vsyncpa [#allocation4], 0  ;;  %s134_s6 = smov [#allocation2]   ;;  %s86_s10 = scalar_lea.hbm %s171_s0, 128 }
   0x2   :  { %s14_s7 = sshll.u32 %s134_s6, 4  ;;  %p87_p0 = scmp.ne.s32.totalorder %s171_s0, %s86_s10  ;;  %s15_s7 = int_to_ptr.vmem [resolvable:$true] %s14_s7 }
   0x3   :  { %p90_p1 = scmp.lt.u32.totalorder %s86_s10, %s171_s0 }
   0x5   :  { %p92_p2 = pnand %p90_p1, %p87_p0 }
   0x7   :  { %95 = shalt.err (!%p92_p2)
}
   0x8   :  { %s96_s15 = scalar_lea.vmem %s15_s7, 128  ;;  %p101_p4 = scmp.lt.s32.totalorder %s15_s7, %s15_s7 }
   0x9   :  { %p97_p3 = scmp.ne.s32.totalorder %s15_s7, %s96_s15  ;;  %p102_p5 = scmp.lt.s32.totalorder %s96_s15, %s96_s15 }
   0xb   :  { %p103_p6 = por %p102_p5, %p101_p4 }
   0xd   :  { %p104_p7 = pnand %p103_p6, %p97_p3 }
   0xf   :  { %107 = shalt.err (!%p104_p7)
}
  0x10   :  { %17 = dma.hbm_to_vmem [thread:$0]  %s171_s0, 128, %s15_s7, [#allocation3]  }
  0x11   :  { %130 = dma.done.wait [#allocation3], 128  }
  0x12   :  { %131 = vsyncadd [#allocation3], 4294967168  ;;  %v37_v0 = vlaneseq  ;;  %v135_v1 = vmov 1983009808   ;;  %v21_v5 = vld [vmem:[#allocation2] sm:$0xff]  ;;  %s136_s18 = smov [#allocation5]  }
  0x13   :  { %v35_v2 = vunpack.c.l.s4 %v135_v1  ;;  %v22_v7 = vunpack.c.0.s8 %v21_v5  ;;  %v23_v8 = vunpack.c.1.s8 %v21_v5  ;;  %v24_v9 = vunpack.c.2.s8 %v21_v5  ;;  %s74_s19 = sshll.u32 %s136_s18, 4  ;;  %s75_s19 = int_to_ptr.vmem [resolvable:$true] %s74_s19 }
  0x14   :  { %v38_v4 = vshrl.u32 %v37_v0, 7  ;;  %v25_v10 = vunpack.c.3.s8 %v21_v5  ;;  %s108_s0 = scalar_lea.vmem %s75_s19, 256  ;;  %p113_p9 = scmp.lt.s32.totalorder %s75_s19, %s75_s19 }
  0x15   :  { %v36_v3 = vunpack.c.0.s8 %v35_v2  ;;  %v26_v11 = vcvt.s32.f32 %v22_v7  ;;  %v27_v12 = vcvt.s32.f32 %v23_v8  ;;  %v28_v13 = vcvt.s32.f32 %v24_v9  ;;  %p109_p8 = scmp.ne.s32.totalorder %s75_s19, %s108_s0  ;;  %p114_p10 = scmp.lt.s32.totalorder %s108_s0, %s108_s0 }
  0x16   :  { %v29_v14 = vcvt.s32.f32 %v25_v10 }
  0x17   :  { %v39_v6 = vsub.s32 %v36_v3, %v38_v4  ;;  %p115_p11 = por %p114_p10, %p113_p9 }
  0x19   :  { %v40_v15 = vrot.slane %v26_v11, %v39_v6  ;;  %v47_v16 = vrot.slane %v27_v12, %v39_v6  ;;  %v55_v17 = vrot.slane %v28_v13, %v39_v6  ;;  %v62_v18 = vrot.slane %v29_v14, %v39_v6  ;;  %p116_p12 = pnand %p115_p11, %p109_p8 }
  0x1b   :  { %v48_v19 = vcombine.low %v40_v15, %v47_v16  ;;  %v63_v20 = vcombine.low %v55_v17, %v62_v18 }
  0x1d   :  { %66 = vst [vmem:[#allocation5] sm:$0xff] %v48_v19  ;;  %67 = vst [vmem:[#allocation5 + $0x8] sm:$0xff] %v63_v20 }
  0x1e   :  { %119 = shalt.err (!%p116_p12)
}
  0x1f   :  { %s120_s22 = scalar_lea.hbm %s172_s1, 256 }
  0x20   :  { %p121_p13 = scmp.ne.s32.totalorder %s172_s1, %s120_s22  ;;  %p124_p0 = scmp.lt.u32.totalorder %s120_s22, %s172_s1 }
  0x22   :  { %p126_p1 = pnand %p124_p0, %p121_p13 }
  0x24   :  { %129 = shalt.err (!%p126_p1)
}
  0x25   :  { %77 = dma.vmem_to_hbm [thread:$0]  %s75_s19, 256, %s172_s1, [#allocation4]  }
  0x26   :  { %132 = dma.done.wait [#allocation4], 256  }
  0x27   :  { %133 = vsyncadd [#allocation4], 4294967040 }
  0x28   :  { %81 = vsyncpa [#allocation3], 1 }
  0x29   :  { %82 = vsyncpa [#allocation4], 1 }

</bundles_post_ra>
